<compile_context>
chip_gen: v6e
topology: v6e:2x2x1
jax: 0.10.0
libtpu: 0.0.40
codegen_flags: <defaults>
</compile_context>

<pallas_src>
import jax
import jax.numpy as jnp
from jax.experimental import pallas as pl
from jax.experimental.pallas import tpu as pltpu

BN_EPS = 1e-5


# ---------------------------------------------------------------------------
# Pallas kernel: dual-branch per-point MLP (conv1x1+BN folded) + max over N
# ---------------------------------------------------------------------------
def _make_kernel(num_layers, D):
    per_branch = 2 * num_layers       # [w0_fused, b0, (w_l, b_l) * (L-1)]

    def kernel(xyz_ref, pts_ref, col_ref, cols_ref, *refs):
        p1 = refs[:per_branch]
        p2 = refs[per_branch:2 * per_branch]
        o1_ref, o2_ref, acc1_ref, acc2_ref, x0_ref = refs[2 * per_branch:]

        n = pl.program_id(2)
        n_last = pl.num_programs(2) - 1

        @pl.when(n == 0)
        def _init():
            acc1_ref[...] = jnp.full(acc1_ref.shape, -jnp.inf, acc1_ref.dtype)
            acc2_ref[...] = jnp.full(acc2_ref.shape, -jnp.inf, acc2_ref.dtype)

        # Zero the aligned xyz slot (rows 0:8) of the layer-0 staging buffer so
        # the zero-weighted gap rows 3:8 are finite (uninitialized VMEM could
        # hold NaN/Inf and 0*NaN would poison the matmul).  All stores below
        # are sublane-aligned (offsets 0 and 8).
        x0_ref[0:8, :] = jnp.zeros((8, x0_ref.shape[1]), jnp.float32)

        def run_branch(a_ref, f_ref, params, acc_ref):
            # Assemble the fused layer-0 input [8+D, NT] once in VMEM:
            #   rows 0:3   <- xyz slab     (raw [1,3,NT] block)
            #   rows 8:8+D <- feature slab (raw [1,D,NT] block)
            # so a single MXU matmul replaces the previous xyz/feature pair.
            x0_ref[0:3, :] = a_ref[0].astype(jnp.float32)
            x0_ref[8:8 + D, :] = f_ref[0].astype(jnp.float32)
            w0 = params[0][...]                    # [C1, 8+D] f32 (gap cols = 0)
            b0 = params[1][...]                    # [C1, 1]   f32
            h = jnp.dot(w0, x0_ref[...], preferred_element_type=jnp.float32) + b0
            h = jnp.maximum(h, 0.0)                # [C1, NT] f32
            for l in range(1, num_layers):
                w = params[2 * l][...]             # [C_l, C_{l-1}]  bf16
                b = params[2 * l + 1][...]         # [C_l, 1]        f32
                h = jnp.dot(w, h.astype(w.dtype),
                            preferred_element_type=jnp.float32) + b
                h = jnp.maximum(h, 0.0)            # [C_l, NT] f32
            # Per-tile lane reduction (XLU slot, idle here) into a tiny
            # [C_last, 1] accumulator instead of a [C_last, NT] running max:
            # frees persistent VMEM so the point tile can be much larger.
            acc_ref[...] = jnp.maximum(acc_ref[...],
                                       jnp.max(h, axis=1, keepdims=True))

        run_branch(xyz_ref, pts_ref, p1, acc1_ref)
        run_branch(col_ref, cols_ref, p2, acc2_ref)

        @pl.when(n == n_last)
        def _finalize():
            o1_ref[0, 0] = acc1_ref[...]
            o2_ref[0, 0] = acc2_ref[...]

    return kernel


# ---------------------------------------------------------------------------
# Sizing helpers (generation-aware VMEM, tile choice, cost estimate)
# ---------------------------------------------------------------------------
def _physical_vmem_bytes():
    try:
        info = pltpu.get_tpu_info()
        for name in ("vmem_capacity_bytes", "vmem_size_bytes", "vmem_bytes"):
            v = getattr(info, name, None)
            if isinstance(v, (int, float)) and v > 0:
                return int(v)
    except Exception:
        pass
    return 64 << 20          # conservative fallback = v7x per-core VMEM


def _branch_channels(params):
    # Logical layer widths [C1, C2, ...] from the folded parameter list.
    return [params[0].shape[0]] + [params[2 * l].shape[0]
                                   for l in range(1, len(params) // 2)]


def _vmem_estimate_bytes(nt, D, params1, params2):
    k0 = 8 + D
    inp = 2 * 2 * (3 + D) * nt * 4                 # 4 data inputs, double-buffered
    par = sum(int(p.size) * p.dtype.itemsize       # params single-buffered
              for p in list(params1) + list(params2))
    peak = 0                                       # branches run sequentially ->
    for params in (params1, params2):              # peak of two consecutive layers
        ch = [k0] + _branch_channels(params)
        for cin, cout in zip(ch[:-1], ch[1:]):
            live = (cin + cout) * nt * 4 + cin * nt * 2   # f32 in/out + bf16 cast
            peak = max(peak, live)
    x0buf = k0 * nt * 4                            # layer-0 staging scratch
    acc = 2 * _branch_channels(params1)[-1] * 128 * 4
    return inp + par + peak + x0buf + acc + (2 << 20)


def _choose_n_tile(N, D, params1, params2, vmem_cap):
    cands = [c for c in (2048, 1024, 512, 256, 128) if N % c == 0]
    if not cands:
        return N              # single full-width block (block dim == array dim)
    budget = int(0.45 * vmem_cap)
    for nt in cands:          # biggest first: per-step overhead amortization
        if _vmem_estimate_bytes(nt, D, params1, params2) <= budget:
            return nt
    return cands[-1]


def _vmem_limit_bytes(est, cap):
    want = max(32 << 20, 2 * est + (16 << 20))
    return int(min(want, int(0.85 * cap)))         # never ask for all of physical


def _cost_estimate(B, N, D, params1, params2):
    flops = 0
    bytes_accessed = 2 * (3 + D) * B * N * 4        # one f32 pass over the inputs
    for params in (params1, params2):
        ch = [3 + D] + _branch_channels(params)
        flops += 2 * B * N * sum(ci * co for ci, co in zip(ch[:-1], ch[1:]))
        bytes_accessed += sum(int(p.size) * p.dtype.itemsize for p in params)
        bytes_accessed += B * ch[-1] * 4
    return pl.CostEstimate(flops=int(flops), transcendentals=0,
                           bytes_accessed=int(bytes_accessed))


def _param_spec(shape):
    # Weights/biases are grid-invariant; single-buffer them (double buffering a
    # constant-index block is pure VMEM waste).  Fall back to the default
    # pipeline mode if this jax version has no pipeline_mode kwarg.
    idx = lambda b, s, n: (0, 0)
    try:
        return pl.BlockSpec(shape, idx, pipeline_mode=pl.Buffered(1))
    except TypeError:
        return pl.BlockSpec(shape, idx)


# ---------------------------------------------------------------------------
# Wrapper: fused dual-branch pointwise MLP + max over points
# ---------------------------------------------------------------------------
def fused_mlp_relu_max(xyz, points, color, colors, params1, params2,
                       n_tile=None, num_point_shards=None):
    """xyz/color: [B,3,N] f32, points/colors: [B,D,N] f32 (channel-major).
    Returns (new_points [B,C_last,1] f32, new_colors [B,C_last,1] f32)."""
    B, _, N = xyz.shape
    D = points.shape[1]
    num_layers = len(params1) // 2
    c_last = params1[-2].shape[0]

    vmem_cap = _physical_vmem_bytes()
    nt = n_tile if n_tile is not None else _choose_n_tile(N, D, params1, params2, vmem_cap)
    assert N % nt == 0, "point count must be divisible by the N tile"
    assert nt == N or nt % 128 == 0, "N tile must be a multiple of 128 (or the full N)"
    n_tiles = N // nt

    # Shard the point axis across TensorCores when the batch axis cannot
    # (B == 1 would otherwise leave the second v7x core idle); partial maxima
    # are merged with one tiny wrapper-side max.
    if num_point_shards is None:
        num_point_shards = 2 if (B == 1 and n_tiles >= 2 and n_tiles % 2 == 0) else 1
    S = num_point_shards
    assert n_tiles % S == 0
    ntps = n_tiles // S

    def data_map(b, s, n):
        return (b, 0, s * ntps + n)

    data_specs = [
        pl.BlockSpec((1, 3, nt), data_map),
        pl.BlockSpec((1, D, nt), data_map),
        pl.BlockSpec((1, 3, nt), data_map),
        pl.BlockSpec((1, D, nt), data_map),
    ]
    all_params = list(params1) + list(params2)
    param_specs = [_param_spec(p.shape) for p in all_params]
    out_spec = pl.BlockSpec((1, 1, c_last, 1), lambda b, s, n: (b, s, 0, 0))

    est = _vmem_estimate_bytes(nt, D, params1, params2)
    out1, out2 = pl.pallas_call(
        _make_kernel(num_layers, D),
        grid=(B, S, ntps),
        in_specs=data_specs + param_specs,
        out_specs=(out_spec, out_spec),
        out_shape=(jax.ShapeDtypeStruct((B, S, c_last, 1), jnp.float32),
                   jax.ShapeDtypeStruct((B, S, c_last, 1), jnp.float32)),
        scratch_shapes=[pltpu.VMEM((c_last, 1), jnp.float32),   # acc branch 1
                        pltpu.VMEM((c_last, 1), jnp.float32),   # acc branch 2
                        pltpu.VMEM((8 + D, nt), jnp.float32)],  # layer-0 staging
        compiler_params=pltpu.CompilerParams(
            dimension_semantics=("parallel", "parallel", "arbitrary"),
            vmem_limit_bytes=_vmem_limit_bytes(est, vmem_cap)),
        cost_estimate=_cost_estimate(B, N, D, params1, params2),
    )(xyz, points, color, colors, *all_params)

    if S > 1:
        out1 = jnp.max(out1, axis=1)
        out2 = jnp.max(out2, axis=1)
    else:
        out1 = out1[:, 0]
        out2 = out2[:, 0]
    return out1, out2


# ---------------------------------------------------------------------------
# Module: parameter construction (BN folding, fused/padded layer-0 weight)
# ---------------------------------------------------------------------------
class PointNetSetAbstractionPallas:
    """group_all=True path of the torch PointNetSetAbstraction; eval-mode BN is
    folded into the 1x1 convolutions and both MLP branches run in one fused
    Pallas kernel."""

    def __init__(self, npoint, radius, nsample, in_channel, mlp, group_all, key,
                 compute_dtype=jnp.bfloat16, n_tile=None, num_point_shards=None):
        # The torch forward only defines `new_colors` on the group_all branch,
        # so that is the path implemented here.
        assert group_all, "only the group_all=True path is implemented"
        # TODO(synk): farthest_point_sample / query_ball_point (group_all=False
        #             path) are data-dependent sort/gather; not implemented here.
        self.npoint, self.radius, self.nsample = npoint, radius, nsample
        self.group_all = group_all
        self.n_tile = n_tile
        self.num_point_shards = num_point_shards
        assert in_channel > 3, "in_channel must be 3 + D with D >= 1"
        D = in_channel - 3

        def init_branch(key, last_channel):
            raw = []
            for out_channel in mlp:
                key, kw, kb, kg, kbeta, km, kv = jax.random.split(key, 7)
                w = 0.1 * jax.random.normal(kw, (out_channel, last_channel), jnp.float32)
                b = 0.1 * jax.random.normal(kb, (out_channel,), jnp.float32)
                gamma = 1.0 + 0.1 * jax.random.normal(kg, (out_channel,), jnp.float32)
                beta = 0.1 * jax.random.normal(kbeta, (out_channel,), jnp.float32)
                r_mean = 0.1 * jax.random.normal(km, (out_channel,), jnp.float32)
                r_var = jnp.abs(jax.random.normal(kv, (out_channel,), jnp.float32)) + 0.5
                raw.append((w, b, gamma, beta, r_mean, r_var))
                last_channel = out_channel
            return raw

        def fold_branch(raw):
            params = []
            for li, (w, b, gamma, beta, r_mean, r_var) in enumerate(raw):
                # Fold eval-mode BatchNorm into the 1x1 conv weight / bias.
                s = gamma / jnp.sqrt(r_var + BN_EPS)
                w_eff = w * s[:, None]                                  # [C_out, C_in]
                b_eff = ((b - r_mean) * s + beta).reshape(-1, 1)
                if li == 0:
                    # Fused layer-0 weight over the in-kernel assembled input
                    # [xyz(3) | zero gap(5) | feat(D)]; zero columns for the gap.
                    c1 = w_eff.shape[0]
                    w0 = jnp.zeros((c1, 8 + D), jnp.float32)
                    w0 = w0.at[:, 0:3].set(w_eff[:, :3])
                    w0 = w0.at[:, 8:8 + D].set(w_eff[:, 3:])
                    params += [w0, b_eff]                               # f32 (tiny K)
                else:
                    params += [w_eff.astype(compute_dtype), b_eff]      # bf16 weights
            return params

        k1, k2 = jax.random.split(key)
        self.raw1 = init_branch(k1, in_channel)   # mlp_convs / mlp_bns
        self.raw2 = init_branch(k2, in_channel)   # mlp_convs2 / mlp_bns2
        self.params1 = fold_branch(self.raw1)
        self.params2 = fold_branch(self.raw2)

    def __call__(self, xyz, points, color, colors):
        """
        xyz:   [B, 3, N]   points: [B, D, N]
        color: [B, 3, N]   colors: [B, D, N]
        returns new_xyz [B,3,1], new_points [B,mlp[-1],1],
                new_color [B,3,1], new_colors [B,mlp[-1],1]
        """
        B, C, _ = xyz.shape
        np_out, nc_out = fused_mlp_relu_max(
            xyz, points, color, colors, self.params1, self.params2,
            n_tile=self.n_tile, num_point_shards=self.num_point_shards)
        new_xyz = jnp.zeros((B, C, 1), jnp.float32)   # zeros(B,1,3).permute(0,2,1)
        new_color = new_xyz
        return new_xyz, np_out, new_color, nc_out


# ---------------------------------------------------------------------------
# Pure-JAX reference of the UNFOLDED torch math (conv -> eval BN -> ReLU -> max)
# ---------------------------------------------------------------------------
def _reference_branch(a, f, raw_params):
    h = jnp.concatenate([a, f], axis=1)                         # [B, 3+D, N]
    for (w, b, gamma, beta, r_mean, r_var) in raw_params:
        h = jnp.einsum("oc,bcn->bon", w, h) + b[None, :, None]  # 1x1 conv
        h = (h - r_mean[None, :, None]) * (
            gamma[None, :, None] / jnp.sqrt(r_var[None, :, None] + BN_EPS)
        ) + beta[None, :, None]                                  # eval-mode BN
        h = jnp.maximum(h, 0.0)
    return jnp.max(h, axis=2, keepdims=True)                     # [B, C_last, 1]


if __name__ == "__main__":
    key = jax.random.PRNGKey(0)
    B, N, D = 2, 512, 3          # small shapes: 3 xyz channels + D feature channels
    in_channel = 3 + D
    mlp = [16, 32]

    k_param, kx, kp, kc, kcc = jax.random.split(key, 5)
    xyz = jax.random.normal(kx, (B, 3, N), jnp.float32)
    points = jax.random.normal(kp, (B, D, N), jnp.float32)
    color = jax.random.normal(kc, (B, 3, N), jnp.float32)
    colors = jax.random.normal(kcc, (B, D, N), jnp.float32)

    # Primary path: auto tile choice (largest tile that fits the VMEM budget).
    module = PointNetSetAbstractionPallas(
        npoint=None, radius=None, nsample=None,
        in_channel=in_channel, mlp=mlp, group_all=True, key=k_param)

    new_xyz, new_points, new_color, new_colors = module(xyz, points, color, colors)
    jax.block_until_ready((new_xyz, new_points, new_color, new_colors))

    ref_points = _reference_branch(xyz, points, module.raw1)
    ref_colors = _reference_branch(color, colors, module.raw2)
    assert new_points.shape == (B, mlp[-1], 1)
    assert new_colors.shape == (B, mlp[-1], 1)
    assert new_xyz.shape == (B, 3, 1) and new_color.shape == (B, 3, 1)
    err_p = float(jnp.max(jnp.abs(new_points - ref_points)))
    err_c = float(jnp.max(jnp.abs(new_colors - ref_colors)))
    assert err_p < 2e-2 and err_c < 2e-2, (err_p, err_c)

    # Coverage run: B=1 with a deliberately small tile to exercise the
    # multi-tile running-max accumulation AND the two-shard (per-core) merge
    # path (the auto tile chooser is still the default in real use).
    module_b1 = PointNetSetAbstractionPallas(
        npoint=None, radius=None, nsample=None,
        in_channel=in_channel, mlp=mlp, group_all=True, key=k_param,
        n_tile=128)   # 4 tiles -> 2 shards x 2 tiles at B == 1
    _, np1, _, nc1 = module_b1(xyz[:1], points[:1], color[:1], colors[:1])
    jax.block_until_ready((np1, nc1))
    err_p1 = float(jnp.max(jnp.abs(np1 - ref_points[:1])))
    err_c1 = float(jnp.max(jnp.abs(nc1 - ref_colors[:1])))
    assert err_p1 < 2e-2 and err_c1 < 2e-2, (err_p1, err_c1)

    print("KERNEL_OK")
</pallas_src>

<mosaic_0001>
module attributes {stable_mosaic.version = 11 : i64} {
  func.func @kernel(%arg0: i32, %arg1: i32, %arg2: i32, %arg3: memref<1x3x512xf32, #tpu.memory_space<vmem>>, %arg4: memref<1x3x512xf32, #tpu.memory_space<vmem>>, %arg5: memref<1x3x512xf32, #tpu.memory_space<vmem>>, %arg6: memref<1x3x512xf32, #tpu.memory_space<vmem>>, %arg7: memref<16x11xf32, #tpu.memory_space<vmem>>, %arg8: memref<16x1xf32, #tpu.memory_space<vmem>>, %arg9: memref<32x16xbf16, #tpu.memory_space<vmem>>, %arg10: memref<32x1xf32, #tpu.memory_space<vmem>>, %arg11: memref<16x11xf32, #tpu.memory_space<vmem>>, %arg12: memref<16x1xf32, #tpu.memory_space<vmem>>, %arg13: memref<32x16xbf16, #tpu.memory_space<vmem>>, %arg14: memref<32x1xf32, #tpu.memory_space<vmem>>, %arg15: memref<1x1x32x1xf32, #tpu.memory_space<vmem>>, %arg16: memref<1x1x32x1xf32, #tpu.memory_space<vmem>>, %arg17: memref<32x1xf32, #tpu.memory_space<vmem>>, %arg18: memref<32x1xf32, #tpu.memory_space<vmem>>, %arg19: memref<11x512xf32, #tpu.memory_space<vmem>>) attributes {dimension_semantics = [#tpu.dimension_semantics<parallel>, #tpu.dimension_semantics<parallel>, #tpu.dimension_semantics<arbitrary>], iteration_bounds = array<i64: 2, 1, 1>, scalar_prefetch = 0 : i64, scratch_operands = 3 : i64, tpu.core_type = #tpu.core_type<tc>, window_params = [{transform_indices = @transform_0, window_bounds = array<i64: 1, 3, 512>}, {transform_indices = @transform_1, window_bounds = array<i64: 1, 3, 512>}, {transform_indices = @transform_2, window_bounds = array<i64: 1, 3, 512>}, {transform_indices = @transform_3, window_bounds = array<i64: 1, 3, 512>}, {pipeline_mode = #tpu.pipeline_mode<synchronous>, transform_indices = @transform_4, window_bounds = array<i64: 16, 11>}, {pipeline_mode = #tpu.pipeline_mode<synchronous>, transform_indices = @transform_5, window_bounds = array<i64: 16, 1>}, {pipeline_mode = #tpu.pipeline_mode<synchronous>, transform_indices = @transform_6, window_bounds = array<i64: 32, 16>}, {pipeline_mode = #tpu.pipeline_mode<synchronous>, transform_indices = @transform_7, window_bounds = array<i64: 32, 1>}, {pipeline_mode = #tpu.pipeline_mode<synchronous>, transform_indices = @transform_8, window_bounds = array<i64: 16, 11>}, {pipeline_mode = #tpu.pipeline_mode<synchronous>, transform_indices = @transform_9, window_bounds = array<i64: 16, 1>}, {pipeline_mode = #tpu.pipeline_mode<synchronous>, transform_indices = @transform_10, window_bounds = array<i64: 32, 16>}, {pipeline_mode = #tpu.pipeline_mode<synchronous>, transform_indices = @transform_11, window_bounds = array<i64: 32, 1>}, {transform_indices = @transform_12, window_bounds = array<i64: 1, 1, 32, 1>}, {transform_indices = @transform_13, window_bounds = array<i64: 1, 1, 32, 1>}]} {
    %c0_i32 = arith.constant 0 : i32
    %0 = arith.cmpi eq, %arg2, %c0_i32 : i32
    %1 = arith.extui %0 : i1 to i32
    %c0_i32_0 = arith.constant 0 : i32
    %2 = arith.cmpi ne, %1, %c0_i32_0 : i32
    scf.if %2 {
      %cst_61 = arith.constant 0xFF800000 : f32
      %62 = vector.broadcast %cst_61 : f32 to vector<32x1xf32>
      %c0_62 = arith.constant 0 : index
      %c0_63 = arith.constant 0 : index
      %63 = vector.load %arg17[%c0_62, %c0_63] : memref<32x1xf32, #tpu.memory_space<vmem>>, vector<32x1xf32>
      tpu.vector_store %arg17[%c0_62, %c0_63], %62 {strides = array<i32>} : memref<32x1xf32, #tpu.memory_space<vmem>>, vector<32x1xf32>,
      %cst_64 = arith.constant 0xFF800000 : f32
      %64 = vector.broadcast %cst_64 : f32 to vector<32x1xf32>
      %c0_65 = arith.constant 0 : index
      %c0_66 = arith.constant 0 : index
      %65 = vector.load %arg18[%c0_65, %c0_66] : memref<32x1xf32, #tpu.memory_space<vmem>>, vector<32x1xf32>
      tpu.vector_store %arg18[%c0_65, %c0_66], %64 {strides = array<i32>} : memref<32x1xf32, #tpu.memory_space<vmem>>, vector<32x1xf32>,
    } else {
    }
    %cst = arith.constant 0.000000e+00 : f32
    %3 = vector.broadcast %cst : f32 to vector<8x512xf32>
    %c0 = arith.constant 0 : index
    %c0_1 = arith.constant 0 : index
    %4 = vector.load %arg19[%c0, %c0_1] : memref<11x512xf32, #tpu.memory_space<vmem>>, vector<8x512xf32>
    tpu.vector_store %arg19[%c0, %c0_1], %3 {strides = array<i32>} : memref<11x512xf32, #tpu.memory_space<vmem>>, vector<8x512xf32>,
    %c0_2 = arith.constant 0 : index
    %c0_3 = arith.constant 0 : index
    %c0_4 = arith.constant 0 : index
    %5 = vector.load %arg3[%c0_2, %c0_3, %c0_4] : memref<1x3x512xf32, #tpu.memory_space<vmem>>, vector<1x3x512xf32>
    %6 = vector.shape_cast %5 : vector<1x3x512xf32> to vector<3x512xf32>
    %c0_5 = arith.constant 0 : index
    %c0_6 = arith.constant 0 : index
    %7 = vector.load %arg19[%c0_5, %c0_6] : memref<11x512xf32, #tpu.memory_space<vmem>>, vector<3x512xf32>
    tpu.vector_store %arg19[%c0_5, %c0_6], %6 {strides = array<i32>} : memref<11x512xf32, #tpu.memory_space<vmem>>, vector<3x512xf32>,
    %c0_7 = arith.constant 0 : index
    %c0_8 = arith.constant 0 : index
    %c0_9 = arith.constant 0 : index
    %8 = vector.load %arg4[%c0_7, %c0_8, %c0_9] : memref<1x3x512xf32, #tpu.memory_space<vmem>>, vector<1x3x512xf32>
    %9 = vector.shape_cast %8 : vector<1x3x512xf32> to vector<3x512xf32>
    %c8 = arith.constant 8 : index
    %c0_10 = arith.constant 0 : index
    %10 = vector.load %arg19[%c8, %c0_10] : memref<11x512xf32, #tpu.memory_space<vmem>>, vector<3x512xf32>
    tpu.vector_store %arg19[%c8, %c0_10], %9 {strides = array<i32>} : memref<11x512xf32, #tpu.memory_space<vmem>>, vector<3x512xf32>,
    %c0_11 = arith.constant 0 : index
    %c0_12 = arith.constant 0 : index
    %11 = vector.load %arg7[%c0_11, %c0_12] : memref<16x11xf32, #tpu.memory_space<vmem>>, vector<16x11xf32>
    %c0_13 = arith.constant 0 : index
    %c0_14 = arith.constant 0 : index
    %12 = vector.load %arg8[%c0_13, %c0_14] : memref<16x1xf32, #tpu.memory_space<vmem>>, vector<16x1xf32>
    %c0_15 = arith.constant 0 : index
    %c0_16 = arith.constant 0 : index
    %13 = vector.load %arg19[%c0_15, %c0_16] : memref<11x512xf32, #tpu.memory_space<vmem>>, vector<11x512xf32>
    %cst_17 = arith.constant dense<0.000000e+00> : vector<16x512xf32>
    %14 = tpu.matmul %11, %13, %cst_17 {dimension_numbers = #tpu.dot_dimension_numbers<[1], [0], [0], [1], [0, 0, 1, 1], [], []>} : vector<16x11xf32>, vector<11x512xf32>, vector<16x512xf32> -> vector<16x512xf32>
    %15 = vector.broadcast %12 : vector<16x1xf32> to vector<16x512xf32>
    %16 = arith.addf %14, %15 : vector<16x512xf32>
    %cst_18 = arith.constant 0.000000e+00 : f32
    %17 = vector.broadcast %cst_18 : f32 to vector<16x512xf32>
    %18 = arith.maximumf %16, %17 : vector<16x512xf32>
    %c0_19 = arith.constant 0 : index
    %c0_20 = arith.constant 0 : index
    %19 = vector.load %arg9[%c0_19, %c0_20] : memref<32x16xbf16, #tpu.memory_space<vmem>>, vector<32x16xbf16>
    %c0_21 = arith.constant 0 : index
    %c0_22 = arith.constant 0 : index
    %20 = vector.load %arg10[%c0_21, %c0_22] : memref<32x1xf32, #tpu.memory_space<vmem>>, vector<32x1xf32>
    %21 = arith.truncf %18 : vector<16x512xf32> to vector<16x512xbf16>
    %cst_23 = arith.constant dense<0.000000e+00> : vector<32x512xf32>
    %22 = tpu.matmul %19, %21, %cst_23 {dimension_numbers = #tpu.dot_dimension_numbers<[1], [0], [0], [1], [0, 0, 1, 1], [], []>} : vector<32x16xbf16>, vector<16x512xbf16>, vector<32x512xf32> -> vector<32x512xf32>
    %23 = vector.broadcast %20 : vector<32x1xf32> to vector<32x512xf32>
    %24 = arith.addf %22, %23 : vector<32x512xf32>
    %cst_24 = arith.constant 0.000000e+00 : f32
    %25 = vector.broadcast %cst_24 : f32 to vector<32x512xf32>
    %26 = arith.maximumf %24, %25 : vector<32x512xf32>
    %c0_25 = arith.constant 0 : index
    %c0_26 = arith.constant 0 : index
    %27 = vector.load %arg17[%c0_25, %c0_26] : memref<32x1xf32, #tpu.memory_space<vmem>>, vector<32x1xf32>
    %cst_27 = arith.constant dense<0xFF800000> : vector<32xf32>
    %28 = vector.multi_reduction <maximumf>, %26, %cst_27 [1] : vector<32x512xf32> to vector<32xf32>
    %29 = vector.shape_cast %28 : vector<32xf32> to vector<32x1xf32>
    %30 = arith.maximumf %27, %29 : vector<32x1xf32>
    %c0_28 = arith.constant 0 : index
    %c0_29 = arith.constant 0 : index
    %31 = vector.load %arg17[%c0_28, %c0_29] : memref<32x1xf32, #tpu.memory_space<vmem>>, vector<32x1xf32>
    tpu.vector_store %arg17[%c0_28, %c0_29], %30 {strides = array<i32>} : memref<32x1xf32, #tpu.memory_space<vmem>>, vector<32x1xf32>,
    %c0_30 = arith.constant 0 : index
    %c0_31 = arith.constant 0 : index
    %c0_32 = arith.constant 0 : index
    %32 = vector.load %arg5[%c0_30, %c0_31, %c0_32] : memref<1x3x512xf32, #tpu.memory_space<vmem>>, vector<1x3x512xf32>
    %33 = vector.shape_cast %32 : vector<1x3x512xf32> to vector<3x512xf32>
    %c0_33 = arith.constant 0 : index
    %c0_34 = arith.constant 0 : index
    %34 = vector.load %arg19[%c0_33, %c0_34] : memref<11x512xf32, #tpu.memory_space<vmem>>, vector<3x512xf32>
    tpu.vector_store %arg19[%c0_33, %c0_34], %33 {strides = array<i32>} : memref<11x512xf32, #tpu.memory_space<vmem>>, vector<3x512xf32>,
    %c0_35 = arith.constant 0 : index
    %c0_36 = arith.constant 0 : index
    %c0_37 = arith.constant 0 : index
    %35 = vector.load %arg6[%c0_35, %c0_36, %c0_37] : memref<1x3x512xf32, #tpu.memory_space<vmem>>, vector<1x3x512xf32>
    %36 = vector.shape_cast %35 : vector<1x3x512xf32> to vector<3x512xf32>
    %c8_38 = arith.constant 8 : index
    %c0_39 = arith.constant 0 : index
    %37 = vector.load %arg19[%c8_38, %c0_39] : memref<11x512xf32, #tpu.memory_space<vmem>>, vector<3x512xf32>
    tpu.vector_store %arg19[%c8_38, %c0_39], %36 {strides = array<i32>} : memref<11x512xf32, #tpu.memory_space<vmem>>, vector<3x512xf32>,
    %c0_40 = arith.constant 0 : index
    %c0_41 = arith.constant 0 : index
    %38 = vector.load %arg11[%c0_40, %c0_41] : memref<16x11xf32, #tpu.memory_space<vmem>>, vector<16x11xf32>
    %c0_42 = arith.constant 0 : index
    %c0_43 = arith.constant 0 : index
    %39 = vector.load %arg12[%c0_42, %c0_43] : memref<16x1xf32, #tpu.memory_space<vmem>>, vector<16x1xf32>
    %c0_44 = arith.constant 0 : index
    %c0_45 = arith.constant 0 : index
    %40 = vector.load %arg19[%c0_44, %c0_45] : memref<11x512xf32, #tpu.memory_space<vmem>>, vector<11x512xf32>
    %cst_46 = arith.constant dense<0.000000e+00> : vector<16x512xf32>
    %41 = tpu.matmul %38, %40, %cst_46 {dimension_numbers = #tpu.dot_dimension_numbers<[1], [0], [0], [1], [0, 0, 1, 1], [], []>} : vector<16x11xf32>, vector<11x512xf32>, vector<16x512xf32> -> vector<16x512xf32>
    %42 = vector.broadcast %39 : vector<16x1xf32> to vector<16x512xf32>
    %43 = arith.addf %41, %42 : vector<16x512xf32>
    %cst_47 = arith.constant 0.000000e+00 : f32
    %44 = vector.broadcast %cst_47 : f32 to vector<16x512xf32>
    %45 = arith.maximumf %43, %44 : vector<16x512xf32>
    %c0_48 = arith.constant 0 : index
    %c0_49 = arith.constant 0 : index
    %46 = vector.load %arg13[%c0_48, %c0_49] : memref<32x16xbf16, #tpu.memory_space<vmem>>, vector<32x16xbf16>
    %c0_50 = arith.constant 0 : index
    %c0_51 = arith.constant 0 : index
    %47 = vector.load %arg14[%c0_50, %c0_51] : memref<32x1xf32, #tpu.memory_space<vmem>>, vector<32x1xf32>
    %48 = arith.truncf %45 : vector<16x512xf32> to vector<16x512xbf16>
    %cst_52 = arith.constant dense<0.000000e+00> : vector<32x512xf32>
    %49 = tpu.matmul %46, %48, %cst_52 {dimension_numbers = #tpu.dot_dimension_numbers<[1], [0], [0], [1], [0, 0, 1, 1], [], []>} : vector<32x16xbf16>, vector<16x512xbf16>, vector<32x512xf32> -> vector<32x512xf32>
    %50 = vector.broadcast %47 : vector<32x1xf32> to vector<32x512xf32>
    %51 = arith.addf %49, %50 : vector<32x512xf32>
    %cst_53 = arith.constant 0.000000e+00 : f32
    %52 = vector.broadcast %cst_53 : f32 to vector<32x512xf32>
    %53 = arith.maximumf %51, %52 : vector<32x512xf32>
    %c0_54 = arith.constant 0 : index
    %c0_55 = arith.constant 0 : index
    %54 = vector.load %arg18[%c0_54, %c0_55] : memref<32x1xf32, #tpu.memory_space<vmem>>, vector<32x1xf32>
    %cst_56 = arith.constant dense<0xFF800000> : vector<32xf32>
    %55 = vector.multi_reduction <maximumf>, %53, %cst_56 [1] : vector<32x512xf32> to vector<32xf32>
    %56 = vector.shape_cast %55 : vector<32xf32> to vector<32x1xf32>
    %57 = arith.maximumf %54, %56 : vector<32x1xf32>
    %c0_57 = arith.constant 0 : index
    %c0_58 = arith.constant 0 : index
    %58 = vector.load %arg18[%c0_57, %c0_58] : memref<32x1xf32, #tpu.memory_space<vmem>>, vector<32x1xf32>
    tpu.vector_store %arg18[%c0_57, %c0_58], %57 {strides = array<i32>} : memref<32x1xf32, #tpu.memory_space<vmem>>, vector<32x1xf32>,
    %c0_i32_59 = arith.constant 0 : i32
    %59 = arith.cmpi eq, %arg2, %c0_i32_59 : i32
    %60 = arith.extui %59 : i1 to i32
    %c0_i32_60 = arith.constant 0 : i32
    %61 = arith.cmpi ne, %60, %c0_i32_60 : i32
    scf.if %61 {
      %c0_61 = arith.constant 0 : index
      %c0_62 = arith.constant 0 : index
      %62 = vector.load %arg17[%c0_61, %c0_62] : memref<32x1xf32, #tpu.memory_space<vmem>>, vector<32x1xf32>
      %c0_63 = arith.constant 0 : index
      %c0_64 = arith.constant 0 : index
      %c0_65 = arith.constant 0 : index
      %c0_66 = arith.constant 0 : index
      %63 = vector.load %arg15[%c0_63, %c0_64, %c0_65, %c0_66] : memref<1x1x32x1xf32, #tpu.memory_space<vmem>>, vector<1x1x32x1xf32>
      %64 = vector.shape_cast %63 : vector<1x1x32x1xf32> to vector<32x1xf32>
      %65 = vector.shape_cast %62 : vector<32x1xf32> to vector<1x1x32x1xf32>
      tpu.vector_store %arg15[%c0_63, %c0_64, %c0_65, %c0_66], %65 {strides = array<i32>} : memref<1x1x32x1xf32, #tpu.memory_space<vmem>>, vector<1x1x32x1xf32>,
      %c0_67 = arith.constant 0 : index
      %c0_68 = arith.constant 0 : index
      %66 = vector.load %arg18[%c0_67, %c0_68] : memref<32x1xf32, #tpu.memory_space<vmem>>, vector<32x1xf32>
      %c0_69 = arith.constant 0 : index
      %c0_70 = arith.constant 0 : index
      %c0_71 = arith.constant 0 : index
      %c0_72 = arith.constant 0 : index
      %67 = vector.load %arg16[%c0_69, %c0_70, %c0_71, %c0_72] : memref<1x1x32x1xf32, #tpu.memory_space<vmem>>, vector<1x1x32x1xf32>
      %68 = vector.shape_cast %67 : vector<1x1x32x1xf32> to vector<32x1xf32>
      %69 = vector.shape_cast %66 : vector<32x1xf32> to vector<1x1x32x1xf32>
      tpu.vector_store %arg16[%c0_69, %c0_70, %c0_71, %c0_72], %69 {strides = array<i32>} : memref<1x1x32x1xf32, #tpu.memory_space<vmem>>, vector<1x1x32x1xf32>,
    } else {
    }
    return
  }
  func.func @transform_0(%arg0: i32, %arg1: i32, %arg2: i32) -> (i32, i32, i32) {
    %c1_i32 = arith.constant 1 : i32
    %0 = arith.muli %arg1, %c1_i32 : i32
    %1 = arith.addi %0, %arg2 : i32
    %c0_i32 = arith.constant 0 : i32
    %c0_i32_0 = arith.constant 0 : i32
    return %arg0, %c0_i32, %1 : i32, i32, i32
  }
  func.func @transform_1(%arg0: i32, %arg1: i32, %arg2: i32) -> (i32, i32, i32) {
    %c1_i32 = arith.constant 1 : i32
    %0 = arith.muli %arg1, %c1_i32 : i32
    %1 = arith.addi %0, %arg2 : i32
    %c0_i32 = arith.constant 0 : i32
    %c0_i32_0 = arith.constant 0 : i32
    return %arg0, %c0_i32, %1 : i32, i32, i32
  }
  func.func @transform_2(%arg0: i32, %arg1: i32, %arg2: i32) -> (i32, i32, i32) {
    %c1_i32 = arith.constant 1 : i32
    %0 = arith.muli %arg1, %c1_i32 : i32
    %1 = arith.addi %0, %arg2 : i32
    %c0_i32 = arith.constant 0 : i32
    %c0_i32_0 = arith.constant 0 : i32
    return %arg0, %c0_i32, %1 : i32, i32, i32
  }
  func.func @transform_3(%arg0: i32, %arg1: i32, %arg2: i32) -> (i32, i32, i32) {
    %c1_i32 = arith.constant 1 : i32
    %0 = arith.muli %arg1, %c1_i32 : i32
    %1 = arith.addi %0, %arg2 : i32
    %c0_i32 = arith.constant 0 : i32
    %c0_i32_0 = arith.constant 0 : i32
    return %arg0, %c0_i32, %1 : i32, i32, i32
  }
  func.func @transform_4(%arg0: i32, %arg1: i32, %arg2: i32) -> (i32, i32) {
    %c0_i32 = arith.constant 0 : i32
    %c0_i32_0 = arith.constant 0 : i32
    %c0_i32_1 = arith.constant 0 : i32
    return %c0_i32, %c0_i32_0 : i32, i32
  }
  func.func @transform_5(%arg0: i32, %arg1: i32, %arg2: i32) -> (i32, i32) {
    %c0_i32 = arith.constant 0 : i32
    %c0_i32_0 = arith.constant 0 : i32
    %c0_i32_1 = arith.constant 0 : i32
    return %c0_i32, %c0_i32_0 : i32, i32
  }
  func.func @transform_6(%arg0: i32, %arg1: i32, %arg2: i32) -> (i32, i32) {
    %c0_i32 = arith.constant 0 : i32
    %c0_i32_0 = arith.constant 0 : i32
    %c0_i32_1 = arith.constant 0 : i32
    return %c0_i32, %c0_i32_0 : i32, i32
  }
  func.func @transform_7(%arg0: i32, %arg1: i32, %arg2: i32) -> (i32, i32) {
    %c0_i32 = arith.constant 0 : i32
    %c0_i32_0 = arith.constant 0 : i32
    %c0_i32_1 = arith.constant 0 : i32
    return %c0_i32, %c0_i32_0 : i32, i32
  }
  func.func @transform_8(%arg0: i32, %arg1: i32, %arg2: i32) -> (i32, i32) {
    %c0_i32 = arith.constant 0 : i32
    %c0_i32_0 = arith.constant 0 : i32
    %c0_i32_1 = arith.constant 0 : i32
    return %c0_i32, %c0_i32_0 : i32, i32
  }
  func.func @transform_9(%arg0: i32, %arg1: i32, %arg2: i32) -> (i32, i32) {
    %c0_i32 = arith.constant 0 : i32
    %c0_i32_0 = arith.constant 0 : i32
    %c0_i32_1 = arith.constant 0 : i32
    return %c0_i32, %c0_i32_0 : i32, i32
  }
  func.func @transform_10(%arg0: i32, %arg1: i32, %arg2: i32) -> (i32, i32) {
    %c0_i32 = arith.constant 0 : i32
    %c0_i32_0 = arith.constant 0 : i32
    %c0_i32_1 = arith.constant 0 : i32
    return %c0_i32, %c0_i32_0 : i32, i32
  }
  func.func @transform_11(%arg0: i32, %arg1: i32, %arg2: i32) -> (i32, i32) {
    %c0_i32 = arith.constant 0 : i32
    %c0_i32_0 = arith.constant 0 : i32
    %c0_i32_1 = arith.constant 0 : i32
    return %c0_i32, %c0_i32_0 : i32, i32
  }
  func.func @transform_12(%arg0: i32, %arg1: i32, %arg2: i32) -> (i32, i32, i32, i32) {
    %c0_i32 = arith.constant 0 : i32
    %c0_i32_0 = arith.constant 0 : i32
    %c0_i32_1 = arith.constant 0 : i32
    return %arg0, %arg1, %c0_i32, %c0_i32_0 : i32, i32, i32, i32
  }
  func.func @transform_13(%arg0: i32, %arg1: i32, %arg2: i32) -> (i32, i32, i32, i32) {
    %c0_i32 = arith.constant 0 : i32
    %c0_i32_0 = arith.constant 0 : i32
    %c0_i32_1 = arith.constant 0 : i32
    return %arg0, %arg1, %c0_i32, %c0_i32_0 : i32, i32, i32, i32
  }
}

</mosaic_0001>

<bundles_post_ra>
// kernel: tpu_custom_call.1
= control target key start
LH: loop header
LB: loop body
LE: loop exit
PB: predicated region body
PF: predicated region fallthrough
CT: control target
= control target key end

     0   :  { %s1932_s25 = smov 0   ;;  %s1934_s26 = smov 0   ;;  %s2133_s0 = inlined_call_operand.vmem [shape: f32[2,3,512], index: 0, kind: input, shape index: {}]   ;;  %s2134_s1 = inlined_call_operand.vmem [shape: f32[2,3,512], index: 1, kind: input, shape index: {}]   ;;  %s2135_s2 = inlined_call_operand.vmem [shape: f32[2,3,512], index: 2, kind: input, shape index: {}]   ;;  %s2136_s3 = inlined_call_operand.vmem [shape: f32[2,3,512], index: 3, kind: input, shape index: {}]   ;;  %s2137_s4 = inlined_call_operand.vmem [shape: f32[16,11], index: 4, kind: input, shape index: {}]   ;;  %s2138_s5 = inlined_call_operand.vmem [shape: f32[16,1], index: 5, kind: input, shape index: {}]   ;;  %s2139_s6 = inlined_call_operand.vmem [shape: bf16[32,16], index: 6, kind: input, shape index: {}]   ;;  %s2140_s7 = inlined_call_operand.vmem [shape: f32[32,1], index: 7, kind: input, shape index: {}]   ;;  %s2141_s8 = inlined_call_operand.vmem [shape: f32[16,11], index: 8, kind: input, shape index: {}]   ;;  %s2142_s9 = inlined_call_operand.vmem [shape: f32[16,1], index: 9, kind: input, shape index: {}]   ;;  %s2143_s10 = inlined_call_operand.vmem [shape: bf16[32,16], index: 10, kind: input, shape index: {}]   ;;  %s2144_s11 = inlined_call_operand.vmem [shape: f32[32,1], index: 11, kind: input, shape index: {}]   ;;  %s2145_s12 = inlined_call_operand.vmem [shape: f32[2,1,32,1], index: 12, kind: output, shape index: {0}]   ;;  %s2146_s13 = inlined_call_operand.vmem [shape: f32[2,1,32,1], index: 13, kind: output, shape index: {1}]  }
   0x1   :  { %s1936_s27 = smov 0  }
   0x2 LB: > { %s43_s28 = sadd.s32 1, %s1853_s26  ;;  %p1745_p0 = scmp.ge.s32.totalorder %s1857_s27, 1  ;;  %s1857_s27 = sphi %s1936_s27, %s24_s27   ;;  %s1853_s26 = sphi %s1934_s26, %s2148_s26   ;;  %s1849_s25 = sphi %s1932_s25, %s2147_s25  }
   0x3   : > { %p45_p1 = scmp.ge.s32.totalorder %s43_s28, 2  ;;  %p487_p2 = scmp.lt.s32.totalorder %s1857_s27, 3 }
   0x5   : > { %s2150_s28 = smov (%p45_p1, %s43_s28), 0  ;;  %p488_p3 = pnand %p1745_p0, %p487_p2 }
   0x6   : > { %p581_p4 = scmp.lt.s32.totalorder (!%p488_p3), %s1849_s25, 1 }
   0x7   : > { %491 = sbr.rel (%p488_p3) target bundleno = 830 (0x33e), region = 68 }
   0xc   : > { %v1859_v0 = vmov 0.0   ;;  %v689_v1 = vld [vmem:[%s2138_s5] sm:$0xff]  ;;  %s2152_s25 = smov (!%p581_p4, %s1849_s25), 1  ;;  %v1860_v2 = vmov 0   ;;  %v690_v3 = vld [vmem:[%s2138_s5 + $0x8] sm:$0xff]  ;;  %v897_v17 = vld [vmem:[%s2140_s7 + $0x10] sm:$0xff] }
   0xd   : > { %660 = vst [vmem:[#allocation4] sm:$0xff] %v1859_v0  ;;  %659 = vst [vmem:[#allocation4 + $0x30] sm:$0xff] %v1859_v0  ;;  %793 = vmatprep.mubr.f32.mxu0 %v1859_v0  ;;  %870 = vmatprep.mubr.f32.mxu1 %v1859_v0  ;;  %s1788_s14 = sshll.u32 %s2152_s25, 4  ;;  %v895_v10 = vld [vmem:[%s2140_s7] sm:$0xff]  ;;  %vm716_vm0 = vcmask 1042432   ;;  %vm709_vm1 = vcmask 89088  }
   0xe   : > { %661 = vst [vmem:[#allocation4 + $0x18] sm:$0xff] %v1859_v0  ;;  %662 = vst [vmem:[#allocation4 + $0x10] sm:$0xff] %v1859_v0  ;;  %1821 = vset.pattern.permute.xlu0 %v1860_v2  ;;  %1822 = vset.pattern.permute.xlu1 %v1860_v2  ;;  %s600_s19 = scalar_lea.vmem %s2134_s1, %s1788_s14  ;;  %s624_s22 = scalar_lea.vmem %s2136_s3, %s1788_s14  ;;  %v687_v30 = vld [vmem:[%s2137_s4] sm:$0xff]  ;;  %v688_v32 = vld [vmem:[%s2137_s4 + $0x8] sm:$0xff]  ;;  %vm933_vm2 = vcmask 130048   ;;  %vm650_vm3 = vcmask 7168  }
   0xf   : > { %701 = vperm.xlu0 %1821, %v689_v1   ;;  %v675_v4 = vld [vmem:[%s600_s19] sm:$0x77]  ;;  %v676_v5 = vld [vmem:[%s600_s19 + $0x8] sm:$0x77]  ;;  %s588_s29 = scalar_lea.vmem %s2133_s0, %s1788_s14  ;;  %s612_s18 = scalar_lea.vmem %s2135_s2, %s1788_s14  ;;  %v1327_v33 = vld [vmem:[%s2144_s11 + $0x10] sm:$0xff] }
  0x10   : > { %v679_v6 = vcombine.high %v675_v4, %v675_v4  ;;  %683 = vst [vmem:[#allocation4 + $0x8] sm:$0x7] %v675_v4  ;;  %v680_v7 = vcombine.high %v676_v5, %v676_v5  ;;  %685 = vst [vmem:[#allocation4 + $0x28] sm:$0x7] %v676_v5  ;;  %v663_v8 = vld [vmem:[%s588_s29] sm:$0x77] }
  0x11   : > { %v664_v9 = vld [vmem:[%s588_s29 + $0x8] sm:$0x77]  ;;  %v667_v11 = vcombine.high %v663_v8, %v663_v8  ;;  %671 = vst [vmem:[#allocation4 + $0x30] sm:$0x7] %v663_v8  ;;  %v1107_v13 = vld [vmem:[%s624_s22] sm:$0x77] }
  0x12   : > { %684 = vst [vmem:[#allocation4 + $0x20] sm:$0x7] %v679_v6  ;;  %686 = vst [vmem:[#allocation4 + $0x38] sm:$0x7] %v680_v7  ;;  %v668_v12 = vcombine.high %v664_v9, %v664_v9  ;;  %v1108_v14 = vld [vmem:[%s624_s22 + $0x8] sm:$0x77]  ;;  %v1111_v18 = vcombine.high %v1107_v13, %v1107_v13 }
  0x13   : > { %706 = vperm.xlu0 %1821, %v690_v3   ;;  %673 = vst [vmem:[#allocation4 + $0x18] sm:$0x7] %v664_v9  ;;  %672 = vst [vmem:[#allocation4] sm:$0x7] %v667_v11  ;;  %v1095_v15 = vld [vmem:[%s612_s18] sm:$0x77]  ;;  %v1112_v19 = vcombine.high %v1108_v14, %v1108_v14 }
  0x14   : > { %674 = vst [vmem:[#allocation4 + $0x10] sm:$0x7] %v668_v12  ;;  %v1096_v16 = vld [vmem:[%s612_s18 + $0x8] sm:$0x77]  ;;  %v1099_v22 = vcombine.high %v1095_v15, %v1095_v15  ;;  %v1325_v31 = vld [vmem:[%s2144_s11] sm:$0xff]  ;;  %v898_v37 = vld [vmem:[%s2140_s7 + $0x18] sm:$0xff] }
  0x15   : > { %v1100_v23 = vcombine.high %v1096_v16, %v1096_v16  ;;  %v1121_v34 = vld [vmem:[%s2142_s9] sm:$0xff]  ;;  %v1122_v35 = vld [vmem:[%s2142_s9 + $0x8] sm:$0xff]  ;;  %v1328_v39 = vld [vmem:[%s2144_s11 + $0x18] sm:$0xff]  ;;  %s1792_s30 = sshll.u32 %s2152_s25, 5 }
  0x16   : > { %1133 = vperm.xlu1 %1822, %v1121_v34   ;;  %v896_v36 = vld [vmem:[%s2140_s7 + $0x8] sm:$0xff]  ;;  %s635_s17 = scalar_lea.vmem %s2145_s12, %s1792_s30  ;;  %s644_s20 = scalar_lea.vmem %s2146_s13, %s1792_s30 }
  0x17   : > { %905 = vperm.xlu0 %1821, %v895_v10   ;;  %v695_v20 = vld [vmem:[#allocation4 + $0x8] sm:$0x7]  ;;  %v1831_v10 = vld [vmem:[%s2139_s6] sm:$0xff]  }
  0x18   : > { %v697_v21 = vld [vmem:[#allocation4 + $0x28] sm:$0x7]  ;;  %1115 = vst [vmem:[#allocation4 + $0x8] sm:$0x7] %v1107_v13  ;;  %v691_v26 = vld [vmem:[#allocation4 + $0x30] sm:$0xff] }
  0x19   : > { %1117 = vst [vmem:[#allocation4 + $0x28] sm:$0x7] %v1108_v14  ;;  %v696_v24 = vld [vmem:[#allocation4 + $0x20] sm:$0x7]  ;;  %v698_v25 = vld [vmem:[#allocation4 + $0x38] sm:$0x7] }
  0x1a   : > { %1758 = vmatprep.subr.msk.mxu0 %vm716_vm0, %v696_v24  ;;  %1116 = vst [vmem:[#allocation4 + $0x20] sm:$0x7] %v1111_v18  ;;  %1762 = vmatprep.subr.msk.mxu1 %vm716_vm0, %v698_v25  ;;  %1118 = vst [vmem:[#allocation4 + $0x38] sm:$0x7] %v1112_v19  ;;  %v693_v27 = vld [vmem:[#allocation4 + $0x18] sm:$0xff]  ;;  %v692_v28 = vld [vmem:[#allocation4] sm:$0xff] }
  0x1b   : > { %915 = vperm.xlu0 %1821, %v897_v17   ;;  %1103 = vst [vmem:[#allocation4 + $0x30] sm:$0x7] %v1095_v15  ;;  %1759 = vmatpush1.msk.msra.mxu0 %vm716_vm0, %v695_v20  ;;  %v694_v29 = vld [vmem:[#allocation4 + $0x10] sm:$0xff]  ;;  %1105 = vst [vmem:[#allocation4 + $0x18] sm:$0x7] %v1096_v16  ;;  %v1326_v38 = vld [vmem:[%s2144_s11 + $0x8] sm:$0xff] }
  0x1c   : > { %1763 = vmatpush1.msk.msra.mxu1 %vm716_vm0, %v697_v21  ;;  %759 = vmatprep.subr.mxu0 %v692_v28  ;;  %1104 = vst [vmem:[#allocation4] sm:$0x7] %v1099_v22  ;;  %1106 = vst [vmem:[#allocation4 + $0x10] sm:$0x7] %v1100_v23  ;;  %v1832_v17 = vld [vmem:[%s2139_s6 + $0x8] sm:$0xff]   ;;  %v1119_v18 = vld [vmem:[%s2141_s8] sm:$0xff] }
  0x1d   : > { %836 = vmatprep.subr.mxu1 %v694_v29  ;;  %760 = vmatpush1.msra.mxu0 %v691_v26  ;;  %v1120_v19 = vld [vmem:[%s2141_s8 + $0x8] sm:$0xff]  ;;  %v1861_v20 = vmov -inf  }
  0x1e   : > { %837 = vmatpush1.msra.mxu1 %v693_v27  ;;  %1760 = vmatmul.mubr.msk.f32.vlgmr.msra.gmra.mxu0 %vm709_vm1, %v687_v30  ;;  %651 = vst.msk [vmem:[#allocation2] sm:$0xff] %vm650_vm3, %v1861_v20  ;;  %652 = vst.msk [vmem:[#allocation2 + $0x8] sm:$0xff] %vm650_vm3, %v1861_v20 }
  0x1f   : > { %1764 = vmatmul.mubr.msk.f32.vlgmr.msra.gmra.mxu1 %vm709_vm1, %v687_v30  ;;  %799 = vmatprep.mubr.f32.mxu0 %v1859_v0  ;;  %v1127_v11 = vld [vmem:[#allocation4 + $0x8] sm:$0x7]  ;;  %653 = vst.msk [vmem:[#allocation2 + $0x10] sm:$0xff] %vm650_vm3, %v1861_v20  ;;  %654 = vst.msk [vmem:[#allocation2 + $0x18] sm:$0xff] %vm650_vm3, %v1861_v20 }
  0x20   : > { %876 = vmatprep.mubr.f32.mxu1 %v1859_v0  ;;  %1335 = vperm.xlu0 %1821, %v1325_v31   ;;  %v1129_v12 = vld [vmem:[#allocation4 + $0x28] sm:$0x7]  ;;  %655 = vst.msk [vmem:[#allocation3] sm:$0xff] %vm650_vm3, %v1861_v20  ;;  %656 = vst.msk [vmem:[#allocation3 + $0x8] sm:$0xff] %vm650_vm3, %v1861_v20 }
  0x21   : > { %1138 = vperm.xlu1 %1822, %v1122_v35   ;;  %v1128_v8 = vld [vmem:[#allocation4 + $0x20] sm:$0x7]  ;;  %v1130_v9 = vld [vmem:[#allocation4 + $0x38] sm:$0x7]  ;;  %657 = vst.msk [vmem:[#allocation3 + $0x10] sm:$0xff] %vm650_vm3, %v1861_v20  ;;  %658 = vst.msk [vmem:[#allocation3 + $0x18] sm:$0xff] %vm650_vm3, %v1861_v20 }
  0x22   : > { %1761 = vmatmul.mubr.msk.f32.gmra.mxu0 %vm709_vm1, %v688_v32  ;;  %v1123_v15 = vld [vmem:[#allocation4 + $0x30] sm:$0xff]  ;;  %v1125_v16 = vld [vmem:[#allocation4 + $0x18] sm:$0xff] }
  0x23   : > { %1765 = vmatmul.mubr.msk.f32.gmra.mxu1 %vm709_vm1, %v688_v32  ;;  %972 = vmatprep.mubr.bf16.mxu0 %v1860_v2  ;;  %v1124_v13 = vld [vmem:[#allocation4] sm:$0xff]  ;;  %v1126_v14 = vld [vmem:[#allocation4 + $0x10] sm:$0xff] }
  0x24   : > { %1025 = vmatprep.mubr.bf16.mxu1 %v1860_v2  ;;  %1345 = vperm.xlu0 %1821, %v1327_v33  }
  0x25   : > { %910 = vperm.xlu1 %1822, %v896_v36  }
  0x29   : > { %920 = vperm.xlu1 %1822, %v898_v37  }
  0x2d   : > { %1340 = vperm.xlu1 %1822, %v1326_v38  }
  0x31   : > { %1350 = vperm.xlu1 %1822, %v1328_v39  }
  0x8a   : > { %v702_v40 = vpop.permute.xlu0 %701 }
  0x8e   : > { %v707_v45 = vpop.permute.xlu0 %706 }
  0x92   : > { %v906_v22 = vpop.permute.xlu0 %905 }
  0x96   : > { %v916_v39 = vpop.permute.xlu0 %915 }
  0xde   : > { %v795_v41 = vpop.f32.mrf.mxu0 }
  0xdf   : > { %v872_v42 = vpop.f32.mrf.mxu1  ;;  %v796_v52 = vadd.f32 %v795_v41, %v702_v40 }
  0xe0   : > { %v797_v43 = vpop.f32.mrf.mxu0  ;;  %v873_v53 = vadd.f32 %v872_v42, %v702_v40 }
  0xe1   : > { %v874_v44 = vpop.f32.mrf.mxu1  ;;  %v798_v48 = vadd.f32 %v797_v43, %v702_v40  ;;  %v883_v1 = vmax.f32 %v796_v52, 0.0 }
  0xe2   : > { %v801_v46 = vpop.f32.mrf.mxu0  ;;  %v875_v49 = vadd.f32 %v874_v44, %v702_v40  ;;  %v885_v3 = vmax.f32 %v873_v53, 0.0 }
  0xe3   : > { %v878_v47 = vpop.f32.mrf.mxu1  ;;  %v802_v50 = vadd.f32 %v801_v46, %v707_v45  ;;  %v884_v60 = vmax.f32 %v798_v48, 0.0 }
  0xe4   : > { %v879_v51 = vadd.f32 %v878_v47, %v707_v45  ;;  %v803_v54 = vpop.f32.mrf.mxu0  ;;  %v886_v61 = vmax.f32 %v875_v49, 0.0 }
  0xe5   : > { %v880_v55 = vpop.f32.mrf.mxu1  ;;  %v804_v56 = vadd.f32 %v803_v54, %v707_v45  ;;  %v887_v58 = vmax.f32 %v802_v50, 0.0 }
  0xe6   : > { %v881_v57 = vadd.f32 %v880_v55, %v707_v45  ;;  %v889_v59 = vmax.f32 %v879_v51, 0.0 }
  0xe7   : > { %v888_v62 = vmax.f32 %v804_v56, 0.0  ;;  %v899_v6 = vpack.c.bf16 %v887_v58, %v883_v1 }
  0xe8   : > { %v890_v63 = vmax.f32 %v881_v57, 0.0  ;;  %v901_v7 = vpack.c.bf16 %v889_v59, %v885_v3 }
  0xe9   : > { %v900_v4 = vpack.c.bf16 %v888_v62, %v884_v60 }
  0xea   : > { %v902_v5 = vpack.c.bf16 %v890_v63, %v886_v61 }
  0xeb   : > { %954 = vmatprep.subr.bf16.mxu0 %v900_v4 }
  0xec   : > { %1007 = vmatprep.subr.bf16.mxu1 %v902_v5  ;;  %955 = vmatpush1.bf16.msra.mxu0 %v899_v6 }
  0xed   : > { %1008 = vmatpush1.bf16.msra.mxu1 %v901_v7  ;;  %1772 = vmatprep.subr.msk.mxu0 %vm716_vm0, %v1128_v8 }
  0xee   : > { %1776 = vmatprep.subr.msk.mxu1 %vm716_vm0, %v1130_v9 }
  0xef   : > { %1768 = vmatmul.mubr.msk.bf16.vlgmr.msra.gmra.mxu0 %vm933_vm2, %v1831_v10 }
  0xf0   : > { %1770 = vmatmul.mubr.msk.bf16.vlgmr.msra.gmra.mxu1 %vm933_vm2, %v1831_v10  ;;  %1773 = vmatpush1.msk.msra.mxu0 %vm716_vm0, %v1127_v11 }
  0xf1   : > { %982 = vmatprep.mubr.bf16.mxu0 %v1860_v2  ;;  %1035 = vmatprep.mubr.bf16.mxu1 %v1860_v2 }
  0xf2   : > { %1777 = vmatpush1.msk.msra.mxu1 %vm716_vm0, %v1129_v12  ;;  %1189 = vmatprep.subr.mxu0 %v1124_v13 }
  0xf3   : > { %1266 = vmatprep.subr.mxu1 %v1126_v14  ;;  %1190 = vmatpush1.msra.mxu0 %v1123_v15 }
  0xf4   : > { %1267 = vmatpush1.msra.mxu1 %v1125_v16 }
  0xf7   : > { %1769 = vmatmul.mubr.msk.bf16.gmra.mxu0 %vm933_vm2, %v1832_v17 }
  0xf8   : > { %1771 = vmatmul.mubr.msk.bf16.gmra.mxu1 %vm933_vm2, %v1832_v17  ;;  %1223 = vmatprep.mubr.f32.mxu0 %v1859_v0 }
  0xf9   : > { %1300 = vmatprep.mubr.f32.mxu1 %v1859_v0 }
  0xff   : > { %1774 = vmatmul.mubr.msk.f32.vlgmr.msra.gmra.mxu0 %vm709_vm1, %v1119_v18 }
 0x100   : > { %1778 = vmatmul.mubr.msk.f32.vlgmr.msra.gmra.mxu1 %vm709_vm1, %v1119_v18  ;;  %1229 = vmatprep.mubr.f32.mxu0 %v1859_v0 }
 0x101   : > { %1306 = vmatprep.mubr.f32.mxu1 %v1859_v0  ;;  %v2067_v0 = vpop.permute.xlu1 %1133 }
 0x103   : > { %1775 = vmatmul.mubr.msk.f32.gmra.mxu0 %vm709_vm1, %v1120_v19 }
 0x104   : > { %1779 = vmatmul.mubr.msk.f32.gmra.mxu1 %vm709_vm1, %v1120_v19  ;;  %1401 = vmatprep.mubr.bf16.mxu0 %v1860_v2 }
 0x105   : > { %1454 = vmatprep.mubr.bf16.mxu1 %v1860_v2  ;;  %v2069_v21 = vpop.permute.xlu1 %1138 }
 0x109   : > { %v911_v26 = vpop.permute.xlu1 %910 }
 0x10d   : > { %v921_v57 = vpop.permute.xlu1 %920 }
 0x1af   : > { %v974_v23 = vpop.f32.mrf.mxu0 }
 0x1b0   : > { %v1027_v24 = vpop.f32.mrf.mxu1  ;;  %v975_v25 = vadd.f32 %v974_v23, %v906_v22 }
 0x1b1   : > { %v976_v27 = vpop.f32.mrf.mxu0  ;;  %v1028_v29 = vadd.f32 %v1027_v24, %v906_v22 }
 0x1b2   : > { %v1029_v28 = vpop.f32.mrf.mxu1  ;;  %v977_v30 = vadd.f32 %v976_v27, %v906_v22  ;;  %v1046_v33 = vmax.f32 %v975_v25, 0.0 }
 0x1b3   : > { %v978_v31 = vpop.f32.mrf.mxu0  ;;  %v1030_v36 = vadd.f32 %v1029_v28, %v906_v22  ;;  %v1048_v40 = vmax.f32 %v1028_v29, 0.0 }
 0x1b4   : > { %v1031_v32 = vpop.f32.mrf.mxu1  ;;  %v1047_v34 = vmax.f32 %v977_v30, 0.0  ;;  %v979_v35 = vadd.f32 %v978_v31, %v911_v26 }
 0x1b5   : > { %v980_v37 = vpop.f32.mrf.mxu0  ;;  %v1032_v42 = vadd.f32 %v1031_v32, %v911_v26  ;;  %v1049_v50 = vmax.f32 %v1030_v36, 0.0 }
 0x1b6   : > { %v1033_v38 = vpop.f32.mrf.mxu1  ;;  %v1066_v41 = vmax.f32 %v1046_v33, %v1047_v34  ;;  %v981_v43 = vadd.f32 %v980_v37, %v911_v26  ;;  %v1050_v46 = vmax.f32 %v979_v35, 0.0 }
 0x1b7   : > { %v984_v44 = vpop.f32.mrf.mxu0  ;;  %v1034_v51 = vadd.f32 %v1033_v38, %v911_v26  ;;  %v1052_v54 = vmax.f32 %v1032_v42, 0.0 }
 0x1b8   : > { %v1037_v45 = vpop.f32.mrf.mxu1  ;;  %v1051_v47 = vmax.f32 %v981_v43, 0.0  ;;  %v985_v48 = vadd.f32 %v984_v44, %v916_v39  ;;  %v1067_v49 = vmax.f32 %v1066_v41, %v1048_v40 }
 0x1b9   : > { %v986_v52 = vpop.f32.mrf.mxu0  ;;  %v1038_v56 = vadd.f32 %v1037_v45, %v916_v39  ;;  %v1053_v4 = vmax.f32 %v1034_v51, 0.0 }
 0x1ba   : > { %v1039_v53 = vpop.f32.mrf.mxu1  ;;  %v1071_v55 = vmax.f32 %v1050_v46, %v1051_v47  ;;  %v987_v58 = vadd.f32 %v986_v52, %v916_v39  ;;  %v1068_v61 = vmax.f32 %v1067_v49, %v1049_v50  ;;  %v1054_v62 = vmax.f32 %v985_v48, 0.0  ;;  %v1834_v52 = vld [vmem:[%s2143_s10 + $0x8] sm:$0xff]  }
 0x1bb   : > { %v988_v59 = vpop.f32.mrf.mxu0  ;;  %v1040_v5 = vadd.f32 %v1039_v53, %v916_v39  ;;  %v1056_v8 = vmax.f32 %v1038_v56, 0.0  ;;  %v1336_v53 = vpop.permute.xlu0 %1335  ;;  %v1062_v56 = vld [vmem:[#allocation2] sm:$0xff] }
 0x1bc   : > { %v1041_v60 = vpop.f32.mrf.mxu1  ;;  %v1055_v63 = vmax.f32 %v987_v58, 0.0  ;;  %v989_v1 = vadd.f32 %v988_v59, %v921_v57  ;;  %v1072_v3 = vmax.f32 %v1071_v55, %v1052_v54  ;;  %1069 = vmax.xlane.f32.xlu0 %v1068_v61  ;;  %v1341_v54 = vpop.permute.xlu1 %1340 }
 0x1bd   : > { %v990_v6 = vpop.f32.mrf.mxu0  ;;  %v1042_v10 = vadd.f32 %v1041_v60, %v921_v57  ;;  %v1057_v18 = vmax.f32 %v1040_v5, 0.0  ;;  %v1063_v60 = vld [vmem:[#allocation2 + $0x8] sm:$0xff] }
 0x1be   : > { %v1043_v7 = vpop.f32.mrf.mxu1  ;;  %v1076_v9 = vmax.f32 %v1054_v62, %v1055_v63  ;;  %v991_v11 = vadd.f32 %v990_v6, %v921_v57  ;;  %v1073_v14 = vmax.f32 %v1072_v3, %v1053_v4  ;;  %v1058_v15 = vmax.f32 %v989_v1, 0.0  ;;  %v1064_v62 = vld [vmem:[#allocation2 + $0x10] sm:$0xff]  ;;  %v1065_v4 = vld [vmem:[#allocation2 + $0x18] sm:$0xff] }
 0x1bf   : > { %v1225_v12 = vpop.f32.mrf.mxu0  ;;  %v1044_v19 = vadd.f32 %v1043_v7, %v921_v57  ;;  %v1060_v23 = vmax.f32 %v1042_v10, 0.0  ;;  %v1346_v55 = vpop.permute.xlu0 %1345 }
 0x1c0   : > { %v1302_v13 = vpop.f32.mrf.mxu1  ;;  %v1059_v16 = vmax.f32 %v991_v11, 0.0  ;;  %v1077_v17 = vmax.f32 %v1076_v9, %v1056_v8  ;;  %1074 = vmax.xlane.f32.xlu1 %v1073_v14  ;;  %v1226_v34 = vadd.f32 %v1225_v12, %v2067_v0  ;;  %v2091_v57 = vpop.permute.xlu1 %1350 }
 0x1c1   : > { %v1227_v20 = vpop.f32.mrf.mxu0  ;;  %v1061_v33 = vmax.f32 %v1044_v19, 0.0  ;;  %v1303_v35 = vadd.f32 %v1302_v13, %v2067_v0 }
 0x1c2   : > { %v1304_v22 = vpop.f32.mrf.mxu1  ;;  %v1081_v24 = vmax.f32 %v1058_v15, %v1059_v16  ;;  %v1228_v25 = vadd.f32 %v1227_v20, %v2067_v0  ;;  %v1078_v28 = vmax.f32 %v1077_v17, %v1057_v18  ;;  %v1313_v47 = vmax.f32 %v1226_v34, 0.0 }
 0x1c3   : > { %v1231_v26 = vpop.f32.mrf.mxu0  ;;  %v1305_v29 = vadd.f32 %v1304_v22, %v2067_v0  ;;  %v1315_v48 = vmax.f32 %v1303_v35, 0.0 }
 0x1c4   : > { %v1308_v27 = vpop.f32.mrf.mxu1  ;;  %v1232_v30 = vadd.f32 %v1231_v26, %v2069_v21  ;;  %v1082_v32 = vmax.f32 %v1081_v24, %v1060_v23  ;;  %1079 = vmax.xlane.f32.xlu0 %v1078_v28  ;;  %v1314_v43 = vmax.f32 %v1228_v25, 0.0 }
 0x1c5   : > { %v1309_v31 = vadd.f32 %v1308_v27, %v2069_v21  ;;  %v1233_v36 = vpop.f32.mrf.mxu0  ;;  %v1316_v44 = vmax.f32 %v1305_v29, 0.0 }
 0x1c6   : > { %v1310_v37 = vpop.f32.mrf.mxu1  ;;  %v1234_v38 = vadd.f32 %v1233_v36, %v2069_v21  ;;  %v1317_v40 = vmax.f32 %v1232_v30, 0.0  ;;  %v1083_v42 = vmax.f32 %v1082_v32, %v1061_v33 }
 0x1c7   : > { %v1311_v39 = vadd.f32 %v1310_v37, %v2069_v21  ;;  %v1319_v41 = vmax.f32 %v1309_v31, 0.0  ;;  %v1833_v21 = vld [vmem:[%s2143_s10] sm:$0xff]  }
 0x1c8   : > { %v1318_v45 = vmax.f32 %v1234_v38, 0.0  ;;  %1084 = vmax.xlane.f32.xlu0 %v1083_v42  ;;  %v1329_v0 = vpack.c.bf16 %v1317_v40, %v1313_v47 }
 0x1c9   : > { %v1320_v46 = vmax.f32 %v1311_v39, 0.0  ;;  %v1331_v51 = vpack.c.bf16 %v1319_v41, %v1315_v48 }
 0x1ca   : > { %v1330_v49 = vpack.c.bf16 %v1318_v45, %v1314_v43 }
 0x1cb   : > { %v1332_v50 = vpack.c.bf16 %v1320_v46, %v1316_v44 }
 0x1cc   : > { %1383 = vmatprep.subr.bf16.mxu0 %v1330_v49 }
 0x1cd   : > { %1436 = vmatprep.subr.bf16.mxu1 %v1332_v50  ;;  %1384 = vmatpush1.bf16.msra.mxu0 %v1329_v0 }
 0x1ce   : > { %1437 = vmatpush1.bf16.msra.mxu1 %v1331_v51 }
 0x1d0   : > { %1782 = vmatmul.mubr.msk.bf16.vlgmr.msra.gmra.mxu0 %vm933_vm2, %v1833_v21 }
 0x1d1   : > { %1784 = vmatmul.mubr.msk.bf16.vlgmr.msra.gmra.mxu1 %vm933_vm2, %v1833_v21  ;;  %1411 = vmatprep.mubr.bf16.mxu0 %v1860_v2 }
 0x1d2   : > { %1464 = vmatprep.mubr.bf16.mxu1 %v1860_v2 }
 0x1d8   : > { %1783 = vmatmul.mubr.msk.bf16.gmra.mxu0 %vm933_vm2, %v1834_v52 }
 0x1d9   : > { %1785 = vmatmul.mubr.msk.bf16.gmra.mxu1 %vm933_vm2, %v1834_v52 }
 0x245   : > { %v1070_v58 = vpop.xlane.xlu0 %1069 }
 0x246   : > { %v1086_v59 = vmax.f32 %v1062_v56, %v1070_v58 }
 0x248   : > { %1091 = vst.msk [vmem:[#allocation2] sm:$0xff] %vm650_vm3, %v1086_v59 }
 0x249   : > { %v1075_v2 = vpop.xlane.xlu1 %1074 }
 0x24a   : > { %v1087_v61 = vmax.f32 %v1063_v60, %v1075_v2 }
 0x24c   : > { %1092 = vst.msk [vmem:[#allocation2 + $0x8] sm:$0xff] %vm650_vm3, %v1087_v61 }
 0x24d   : > { %v1080_v63 = vpop.xlane.xlu0 %1079 }
 0x24e   : > { %v1088_v1 = vmax.f32 %v1064_v62, %v1080_v63 }
 0x24f   : > { %v1526_v3 = vld [vmem:[#allocation2] sm:$0xff] }
 0x250   : > { %1530 = vst.msk [vmem:[%s635_s17] sm:$0xff] %vm650_vm3, %v1526_v3  ;;  %1093 = vst.msk [vmem:[#allocation2 + $0x10] sm:$0xff] %vm650_vm3, %v1088_v1 }
 0x251   : > { %v1085_v5 = vpop.xlane.xlu0 %1084 }
 0x252   : > { %v1089_v6 = vmax.f32 %v1065_v4, %v1085_v5 }
 0x253   : > { %v1527_v7 = vld [vmem:[#allocation2 + $0x8] sm:$0xff] }
 0x254   : > { %1531 = vst.msk [vmem:[%s635_s17 + $0x8] sm:$0xff] %vm650_vm3, %v1527_v7  ;;  %1094 = vst.msk [vmem:[#allocation2 + $0x18] sm:$0xff] %vm650_vm3, %v1089_v6  ;;  %v1491_v7 = vld [vmem:[#allocation3] sm:$0xff] }
 0x257   : > { %v1528_v8 = vld [vmem:[#allocation2 + $0x10] sm:$0xff] }
 0x258   : > { %1532 = vst.msk [vmem:[%s635_s17 + $0x10] sm:$0xff] %vm650_vm3, %v1528_v8 }
 0x25b   : > { %v1529_v9 = vld [vmem:[#allocation2 + $0x18] sm:$0xff] }
 0x25c   : > { %1533 = vst.msk [vmem:[%s635_s17 + $0x18] sm:$0xff] %vm650_vm3, %v1529_v9 }
 0x290   : > { %v1403_v10 = vpop.f32.mrf.mxu0 }
 0x291   : > { %v1456_v11 = vpop.f32.mrf.mxu1  ;;  %v1404_v12 = vadd.f32 %v1403_v10, %v1336_v53  ;;  %v1492_v10 = vld [vmem:[#allocation3 + $0x8] sm:$0xff] }
 0x292   : > { %v1405_v13 = vpop.f32.mrf.mxu0  ;;  %v1457_v15 = vadd.f32 %v1456_v11, %v1336_v53 }
 0x293   : > { %v1458_v14 = vpop.f32.mrf.mxu1  ;;  %v1406_v16 = vadd.f32 %v1405_v13, %v1336_v53  ;;  %v1475_v19 = vmax.f32 %v1404_v12, 0.0 }
 0x294   : > { %v1407_v17 = vpop.f32.mrf.mxu0  ;;  %v1459_v23 = vadd.f32 %v1458_v14, %v1336_v53  ;;  %v1477_v26 = vmax.f32 %v1457_v15, 0.0  ;;  %v1494_v15 = vld [vmem:[#allocation3 + $0x18] sm:$0xff] }
 0x295   : > { %v1460_v18 = vpop.f32.mrf.mxu1  ;;  %v1476_v20 = vmax.f32 %v1406_v16, 0.0  ;;  %v1408_v22 = vadd.f32 %v1407_v17, %v1341_v54 }
 0x296   : > { %v1409_v24 = vpop.f32.mrf.mxu0  ;;  %v1461_v28 = vadd.f32 %v1460_v18, %v1341_v54  ;;  %v1478_v36 = vmax.f32 %v1459_v23, 0.0 }
 0x297   : > { %v1462_v25 = vpop.f32.mrf.mxu1  ;;  %v1495_v27 = vmax.f32 %v1475_v19, %v1476_v20  ;;  %v1410_v29 = vadd.f32 %v1409_v24, %v1341_v54  ;;  %v1479_v32 = vmax.f32 %v1408_v22, 0.0 }
 0x298   : > { %v1413_v30 = vpop.f32.mrf.mxu0  ;;  %v1463_v37 = vadd.f32 %v1462_v25, %v1341_v54  ;;  %v1481_v40 = vmax.f32 %v1461_v28, 0.0 }
 0x299   : > { %v1466_v31 = vpop.f32.mrf.mxu1  ;;  %v1480_v33 = vmax.f32 %v1410_v29, 0.0  ;;  %v1414_v34 = vadd.f32 %v1413_v30, %v1346_v55  ;;  %v1496_v35 = vmax.f32 %v1495_v27, %v1477_v26 }
 0x29a   : > { %v1415_v38 = vpop.f32.mrf.mxu0  ;;  %v1467_v42 = vadd.f32 %v1466_v31, %v1346_v55  ;;  %v1482_v51 = vmax.f32 %v1463_v37, 0.0 }
 0x29b   : > { %v1468_v39 = vpop.f32.mrf.mxu1  ;;  %v1500_v41 = vmax.f32 %v1479_v32, %v1480_v33  ;;  %v1416_v43 = vadd.f32 %v1415_v38, %v1346_v55  ;;  %v1497_v47 = vmax.f32 %v1496_v35, %v1478_v36  ;;  %v1483_v48 = vmax.f32 %v1414_v34, 0.0 }
 0x29c   : > { %v1469_v44 = vadd.f32 %v1468_v39, %v1346_v55  ;;  %v1417_v45 = vpop.f32.mrf.mxu0  ;;  %v1485_v53 = vmax.f32 %v1467_v42, 0.0 }
 0x29d   : > { %v1470_v46 = vpop.f32.mrf.mxu1  ;;  %v1484_v49 = vmax.f32 %v1416_v43, 0.0  ;;  %v1418_v50 = vadd.f32 %v1417_v45, %v2091_v57  ;;  %v1501_v0 = vmax.f32 %v1500_v41, %v1481_v40  ;;  %1498 = vmax.xlane.f32.xlu1 %v1497_v47 }
 0x29e   : > { %v1419_v21 = vpop.f32.mrf.mxu0  ;;  %v1471_v56 = vadd.f32 %v1470_v46, %v2091_v57  ;;  %v1486_v59 = vmax.f32 %v1469_v44, 0.0 }
 0x29f   : > { %v1472_v52 = vpop.f32.mrf.mxu1  ;;  %v1505_v54 = vmax.f32 %v1483_v48, %v1484_v49  ;;  %v1420_v58 = vadd.f32 %v1419_v21, %v2091_v57  ;;  %v1502_v55 = vmax.f32 %v1501_v0, %v1482_v51  ;;  %v1487_v60 = vmax.f32 %v1418_v50, 0.0 }
 0x2a0   : > { %v1473_v61 = vadd.f32 %v1472_v52, %v2091_v57  ;;  %v1489_v63 = vmax.f32 %v1471_v56, 0.0  ;;  %v1493_v57 = vld [vmem:[#allocation3 + $0x10] sm:$0xff] }
 0x2a1   : > { %v1488_v2 = vmax.f32 %v1420_v58, 0.0  ;;  %v1506_v62 = vmax.f32 %v1505_v54, %v1485_v53  ;;  %1503 = vmax.xlane.f32.xlu0 %v1502_v55 }
 0x2a2   : > { %v1490_v4 = vmax.f32 %v1473_v61, 0.0 }
 0x2a3   : > { %v1510_v1 = vmax.f32 %v1487_v60, %v1488_v2  ;;  %v1507_v3 = vmax.f32 %v1506_v62, %v1486_v59 }
 0x2a5   : > { %1508 = vmax.xlane.f32.xlu1 %v1507_v3  ;;  %v1511_v5 = vmax.f32 %v1510_v1, %v1489_v63 }
 0x2a7   : > { %v1512_v6 = vmax.f32 %v1511_v5, %v1490_v4 }
 0x2a9   : > { %1513 = vmax.xlane.f32.xlu0 %v1512_v6 }
 0x326   : > { %v1499_v8 = vpop.xlane.xlu1 %1498 }
 0x327   : > { %v1515_v9 = vmax.f32 %v1491_v7, %v1499_v8 }
 0x329   : > { %1519 = vst.msk [vmem:[#allocation3] sm:$0xff] %vm650_vm3, %v1515_v9 }
 0x32a   : > { %v1504_v11 = vpop.xlane.xlu0 %1503 }
 0x32b   : > { %v1516_v12 = vmax.f32 %v1492_v10, %v1504_v11 }
 0x32d   : > { %1520 = vst.msk [vmem:[#allocation3 + $0x8] sm:$0xff] %vm650_vm3, %v1516_v12 }
 0x32e   : > { %v1509_v13 = vpop.xlane.xlu1 %1508 }
 0x32f   : > { %v1517_v14 = vmax.f32 %v1493_v57, %v1509_v13 }
 0x330   : > { %v1534_v16 = vld [vmem:[#allocation3] sm:$0xff] }
 0x331   : > { %1521 = vst.msk [vmem:[#allocation3 + $0x10] sm:$0xff] %vm650_vm3, %v1517_v14  ;;  %1538 = vst.msk [vmem:[%s644_s20] sm:$0xff] %vm650_vm3, %v1534_v16 }
 0x332   : > { %v1514_v17 = vpop.xlane.xlu0 %1513 }
 0x333   : > { %v1518_v18 = vmax.f32 %v1494_v15, %v1514_v17 }
 0x334   : > { %v1535_v19 = vld [vmem:[#allocation3 + $0x8] sm:$0xff] }
 0x335   : > { %1522 = vst.msk [vmem:[#allocation3 + $0x18] sm:$0xff] %vm650_vm3, %v1518_v18  ;;  %1539 = vst.msk [vmem:[%s644_s20 + $0x8] sm:$0xff] %vm650_vm3, %v1535_v19 }
 0x338   : > { %v1536_v20 = vld [vmem:[#allocation3 + $0x10] sm:$0xff] }
 0x339   : > { %1540 = vst.msk [vmem:[%s644_s20 + $0x10] sm:$0xff] %vm650_vm3, %v1536_v20 }
 0x33c   : > { %v1537_v22 = vld [vmem:[#allocation3 + $0x18] sm:$0xff] }
 0x33d   : > { %1541 = vst.msk [vmem:[%s644_s20 + $0x18] sm:$0xff] %vm650_vm3, %v1537_v22 }
 0x33e PF: > { %s24_s27 = sadd.s32 1, %s1857_s27   ;;  %s2147_s25 = smov %s1853_s26 }
 0x33f   : > { %p21_p5 = scmp.ge.s32.totalorder %s24_s27, 4   ;;  %s2148_s26 = smov %s2150_s28 }
 0x341   :  { %23 = sbr.rel (!%p21_p5) target bundleno = 2 (0x2), region = 127 }

</bundles_post_ra>
